<compile_context>
chip_gen: v6e
topology: v6e:2x2x1
jax: 0.10.0
libtpu: 0.0.40
codegen_flags: <defaults>
</compile_context>

<pallas_src>
import functools

import jax
import jax.numpy as jnp
from jax.experimental import pallas as pl
from jax.experimental.pallas import tpu as pltpu

_LANES = 128
_SUBLANES = 8
_TARGET_TILE_BYTES = 2 * 1024 * 1024   # ~2 MiB per input per grid step
_MAX_ACC_WAYS = 8                      # K-way independent partial accumulators
_MIN_KERNEL_ELEMS = 64 * 1024          # below this, plain XLA is faster


def _fused_sums_kernel(p_ref, t_ref, o_ref, *, acc_rows, num_tiles, tile_rows,
                       last_valid_rows):
    i = pl.program_id(0)

    @pl.when(i == 0)
    def _():
        o_ref[...] = jnp.zeros_like(o_ref)

    def fold(x):
        # (tile_rows, 128) -> (acc_rows, 128) with VPU-only adds over the leading
        # axis; acc_rows/8 independent vreg chains hide the add latency.
        return x.reshape(-1, acc_rows, _LANES).sum(axis=0)

    def accumulate(mask_rows):
        p = p_ref[...].astype(jnp.float32)
        t = t_ref[...].astype(jnp.float32)
        if mask_rows is not None:
            # Only emitted for the single ragged last tile.
            row = jax.lax.broadcasted_iota(jnp.int32, p.shape, 0)
            valid = row < mask_rows
            p = jnp.where(valid, p, 0.0)
            t = jnp.where(valid, t, 0.0)
        # torch.nn.BCELoss clamps logs at -100; this also guarantees that zeroed
        # (masked / padded) elements contribute exactly 0 to every sum.
        log_p = jnp.maximum(jnp.log(p), -100.0)
        log_1mp = jnp.maximum(jnp.log(1.0 - p), -100.0)
        bce = -(t * (log_p - log_1mp) + log_1mp)
        o_ref[0] += fold(p * t)      # intersection partials
        o_ref[1] += fold(p + t)      # sum(p) + sum(t) partials
        o_ref[2] += fold(bce)        # BCE-sum partials

    if last_valid_rows == tile_rows:
        # Exact tiling: no masking anywhere.
        accumulate(None)
    else:
        # Ragged tiling (implies num_tiles >= 2): full tiles pay zero mask cost.
        @pl.when(i < num_tiles - 1)
        def _():
            accumulate(None)

        @pl.when(i == num_tiles - 1)
        def _():
            accumulate(last_valid_rows)


def _fused_sums(predictions, targets, *, min_kernel_elems=_MIN_KERNEL_ELEMS):
    """One streaming pass; returns (sum(p*t), sum(p)+sum(t), sum(bce_terms))."""
    assert predictions.shape == targets.shape, "shape mismatch"
    numel = predictions.size
    if numel == 0:
        raise ValueError("AdaptiveLoss: empty input")

    p = predictions.reshape(-1)
    t = targets.reshape(-1)

    if numel < min_kernel_elems:
        # Small-input fast path: launch + pipeline warmup dominates, XLA wins.
        pf = p.astype(jnp.float32)
        tf = t.astype(jnp.float32)
        log_p = jnp.maximum(jnp.log(pf), -100.0)
        log_1mp = jnp.maximum(jnp.log(1.0 - pf), -100.0)
        bce_sum = jnp.sum(-(tf * (log_p - log_1mp) + log_1mp))
        return jnp.sum(pf * tf), jnp.sum(pf) + jnp.sum(tf), bce_sum

    # Lane-dense (rows, 128) view.  This is a free bitcast (no HBM copy) whenever
    # numel % 128 == 0, which is the common case for (B, C, H, W) masks.
    rem = numel % _LANES
    if rem:
        # TODO(synk): this rare ragged-lane case still costs one HBM copy of each
        # input; a 1-D BlockSpec + lane mask would remove it.
        pad = _LANES - rem
        p = jnp.pad(p, (0, pad))
        t = jnp.pad(t, (0, pad))
    rows = p.size // _LANES
    p2 = p.reshape(rows, _LANES)
    t2 = t.reshape(rows, _LANES)

    itemsize = jnp.dtype(predictions.dtype).itemsize
    target_rows = max(_SUBLANES, _TARGET_TILE_BYTES // (_LANES * itemsize))
    tile_rows = min(target_rows, (rows // _SUBLANES) * _SUBLANES)  # multiple of 8
    num_tiles = pl.cdiv(rows, tile_rows)
    last_valid_rows = rows - (num_tiles - 1) * tile_rows

    # Largest K in {8,4,2,1} such that (K*8) divides tile_rows.
    ways = _MAX_ACC_WAYS
    while tile_rows % (ways * _SUBLANES):
        ways //= 2
    acc_rows = ways * _SUBLANES

    kernel = functools.partial(
        _fused_sums_kernel,
        acc_rows=acc_rows,
        num_tiles=num_tiles,
        tile_rows=tile_rows,
        last_valid_rows=last_valid_rows,
    )

    out_bytes = 3 * acc_rows * _LANES * 4
    partials = pl.pallas_call(
        kernel,
        out_shape=jax.ShapeDtypeStruct((3, acc_rows, _LANES), jnp.float32),
        grid_spec=pltpu.PrefetchScalarGridSpec(
            num_scalar_prefetch=0,
            grid=(num_tiles,),
            in_specs=[
                pl.BlockSpec((tile_rows, _LANES), lambda i: (i, 0)),
                pl.BlockSpec((tile_rows, _LANES), lambda i: (i, 0)),
            ],
            # Output block index is constant across the reduction axis -> the
            # output stays resident in VMEM and doubles as the accumulator.
            out_specs=pl.BlockSpec((3, acc_rows, _LANES), lambda i: (0, 0, 0)),
        ),
        compiler_params=pltpu.CompilerParams(
            dimension_semantics=("arbitrary",),
            vmem_limit_bytes=32 * 1024 * 1024),
        cost_estimate=pl.CostEstimate(
            flops=12 * numel,
            transcendentals=2 * numel,
            bytes_accessed=2 * numel * itemsize + out_bytes),
    )(p2, t2)

    inter = jnp.sum(partials[0])
    sum_pt = jnp.sum(partials[1])
    bce_sum = jnp.sum(partials[2])
    return inter, sum_pt, bce_sum


def dice_loss(predictions, targets, smooth=1e-6, reduction="mean",
              min_kernel_elems=_MIN_KERNEL_ELEMS):
    """Pallas TPU implementation of DiceLoss.forward."""
    inter, sum_pt, _ = _fused_sums(predictions, targets,
                                   min_kernel_elems=min_kernel_elems)
    dice = 1.0 - (2.0 * inter + smooth) / (sum_pt + smooth)
    if reduction == "sum":
        return dice * predictions.size
    return dice  # 'mean' and 'none' are identical for a scalar loss


def adaptive_loss(predictions, targets, *, current_epoch=0, max_epochs=100,
                  smooth=1e-6, min_kernel_elems=_MIN_KERNEL_ELEMS):
    """Pallas TPU implementation of AdaptiveLoss.forward."""
    progress = min(current_epoch / max_epochs, 1.0)   # static epoch state
    bce_weight = 1.0 - progress
    dice_weight = progress
    inter, sum_pt, bce_sum = _fused_sums(predictions, targets,
                                         min_kernel_elems=min_kernel_elems)
    bce = bce_sum / predictions.size                  # nn.BCELoss (mean)
    dice = 1.0 - (2.0 * inter + smooth) / (sum_pt + smooth)
    return bce_weight * bce + dice_weight * dice


def _reference(predictions, targets, *, current_epoch=0, max_epochs=100,
               smooth=1e-6):
    p = predictions.reshape(-1).astype(jnp.float32)
    t = targets.reshape(-1).astype(jnp.float32)
    log_p = jnp.maximum(jnp.log(p), -100.0)
    log_1mp = jnp.maximum(jnp.log(1.0 - p), -100.0)
    bce = jnp.mean(-(t * log_p + (1.0 - t) * log_1mp))
    inter = jnp.sum(p * t)
    dice = 1.0 - (2.0 * inter + smooth) / (jnp.sum(p) + jnp.sum(t) + smooth)
    progress = min(current_epoch / max_epochs, 1.0)
    return (1.0 - progress) * bce + progress * dice


if __name__ == "__main__":
    root = jax.random.PRNGKey(0)
    keys = jax.random.split(root, 8)

    def make_inputs(shape, dtype, k):
        kp, kt = jax.random.split(k)
        preds = jax.nn.sigmoid(jax.random.normal(kp, shape, jnp.float32)).astype(dtype)
        tgts = (jax.random.uniform(kt, shape) > 0.5).astype(dtype)
        return preds, tgts

    def check(shape, dtype, k, epoch, atol=1e-5, rtol=2e-4,
              min_kernel_elems=_MIN_KERNEL_ELEMS):
        preds, tgts = make_inputs(shape, dtype, k)
        out = jax.block_until_ready(
            adaptive_loss(preds, tgts, current_epoch=epoch, max_epochs=100,
                          min_kernel_elems=min_kernel_elems))
        ref = _reference(preds, tgts, current_epoch=epoch, max_epochs=100)
        assert jnp.allclose(out, ref, atol=atol, rtol=rtol), (shape, epoch, out, ref)

    # Primary case: module-shaped small input (B, C, H, W) = (2, 4, 16, 16).
    # Uses the small-input fast path at mixed / pure-BCE / pure-Dice epochs.
    for epoch in (30, 0, 100):
        check((2, 4, 16, 16), jnp.float32, keys[0], epoch)

    # Same tiny shape forced through the Pallas kernel (single 16-row tile).
    check((2, 4, 16, 16), jnp.float32, keys[0], 30, min_kernel_elems=0)

    # Kernel path, single 1024-row tile, no masking, zero-copy view.
    check((2, 4, 128, 128), jnp.float32, keys[1], 50)

    # Multi-tile, exact tiling (8192 rows = 2 x 4096-row tiles, no mask).
    check((2, 8, 256, 256), jnp.float32, keys[2], 50)

    # Multi-tile with a ragged last tile (5120 rows -> 4096 + 1024 masked tile).
    check((2, 5, 256, 256), jnp.float32, keys[3], 70)

    # numel % 128 != 0 and above the fast-path threshold: small pad + ragged tile.
    check((1, 3, 150, 151), jnp.float32, keys[4], 40)

    # Native bf16 inputs streamed directly (no fp32 HBM copies).
    check((2, 4, 128, 128), jnp.bfloat16, keys[5], 30, atol=1e-4, rtol=1e-3)

    print("KERNEL_OK")
</pallas_src>

<mosaic_0001>
module attributes {stable_mosaic.version = 11 : i64} {
  func.func @_fused_sums_kernel(%arg0: i32, %arg1: memref<16x128xf32, #tpu.memory_space<vmem>>, %arg2: memref<16x128xf32, #tpu.memory_space<vmem>>, %arg3: memref<3x16x128xf32, #tpu.memory_space<vmem>>) attributes {dimension_semantics = [#tpu.dimension_semantics<arbitrary>], iteration_bounds = array<i64: 1>, scalar_prefetch = 0 : i64, scratch_operands = 0 : i64, tpu.core_type = #tpu.core_type<tc>, window_params = [{transform_indices = @transform_0, window_bounds = array<i64: 16, 128>}, {transform_indices = @transform_1, window_bounds = array<i64: 16, 128>}, {pipeline_mode = #tpu.pipeline_mode<synchronous>, transform_indices = @transform_2, window_bounds = array<i64: 3, 16, 128>}]} {
    %c0_i32 = arith.constant 0 : i32
    %0 = arith.cmpi eq, %arg0, %c0_i32 : i32
    %1 = arith.extui %0 : i1 to i32
    %c0_i32_0 = arith.constant 0 : i32
    %2 = arith.cmpi ne, %1, %c0_i32_0 : i32
    scf.if %2 {
      %cst_26 = arith.constant 0.000000e+00 : f32
      %44 = vector.broadcast %cst_26 : f32 to vector<3x16x128xf32>
      %c0_27 = arith.constant 0 : index
      %c0_28 = arith.constant 0 : index
      %c0_29 = arith.constant 0 : index
      %45 = vector.load %arg3[%c0_27, %c0_28, %c0_29] : memref<3x16x128xf32, #tpu.memory_space<vmem>>, vector<3x16x128xf32>
      tpu.vector_store %arg3[%c0_27, %c0_28, %c0_29], %44 {strides = array<i32>} : memref<3x16x128xf32, #tpu.memory_space<vmem>>, vector<3x16x128xf32>,
    } else {
    }
    %c0 = arith.constant 0 : index
    %c0_1 = arith.constant 0 : index
    %3 = vector.load %arg1[%c0, %c0_1] : memref<16x128xf32, #tpu.memory_space<vmem>>, vector<16x128xf32>
    %c0_2 = arith.constant 0 : index
    %c0_3 = arith.constant 0 : index
    %4 = vector.load %arg2[%c0_2, %c0_3] : memref<16x128xf32, #tpu.memory_space<vmem>>, vector<16x128xf32>
    %5 = math.log %3 : vector<16x128xf32>
    %cst = arith.constant -1.000000e+02 : f32
    %6 = vector.broadcast %cst : f32 to vector<16x128xf32>
    %7 = arith.maximumf %5, %6 : vector<16x128xf32>
    %cst_4 = arith.constant 1.000000e+00 : f32
    %8 = vector.broadcast %cst_4 : f32 to vector<16x128xf32>
    %9 = arith.subf %8, %3 : vector<16x128xf32>
    %10 = math.log %9 : vector<16x128xf32>
    %cst_5 = arith.constant -1.000000e+02 : f32
    %11 = vector.broadcast %cst_5 : f32 to vector<16x128xf32>
    %12 = arith.maximumf %10, %11 : vector<16x128xf32>
    %13 = arith.subf %7, %12 : vector<16x128xf32>
    %14 = arith.mulf %4, %13 : vector<16x128xf32>
    %15 = arith.addf %14, %12 : vector<16x128xf32>
    %cst_6 = arith.constant 0.000000e+00 : f32
    %16 = vector.broadcast %cst_6 : f32 to vector<16x128xf32>
    %17 = arith.subf %16, %15 : vector<16x128xf32>
    %c0_7 = arith.constant 0 : index
    %c0_8 = arith.constant 0 : index
    %c0_9 = arith.constant 0 : index
    %18 = vector.load %arg3[%c0_7, %c0_8, %c0_9] : memref<3x16x128xf32, #tpu.memory_space<vmem>>, vector<1x16x128xf32>
    %19 = vector.shape_cast %18 : vector<1x16x128xf32> to vector<16x128xf32>
    %20 = arith.mulf %3, %4 : vector<16x128xf32>
    %21 = vector.shape_cast %20 : vector<16x128xf32> to vector<1x16x128xf32>
    %cst_10 = arith.constant dense<0.000000e+00> : vector<16x128xf32>
    %22 = vector.multi_reduction <add>, %21, %cst_10 [0] : vector<1x16x128xf32> to vector<16x128xf32>
    %23 = arith.addf %19, %22 : vector<16x128xf32>
    %c0_11 = arith.constant 0 : index
    %c0_12 = arith.constant 0 : index
    %c0_13 = arith.constant 0 : index
    %24 = vector.load %arg3[%c0_11, %c0_12, %c0_13] : memref<3x16x128xf32, #tpu.memory_space<vmem>>, vector<1x16x128xf32>
    %25 = vector.shape_cast %24 : vector<1x16x128xf32> to vector<16x128xf32>
    %26 = vector.shape_cast %23 : vector<16x128xf32> to vector<1x16x128xf32>
    tpu.vector_store %arg3[%c0_11, %c0_12, %c0_13], %26 {strides = array<i32>} : memref<3x16x128xf32, #tpu.memory_space<vmem>>, vector<1x16x128xf32>,
    %c1 = arith.constant 1 : index
    %c0_14 = arith.constant 0 : index
    %c0_15 = arith.constant 0 : index
    %27 = vector.load %arg3[%c1, %c0_14, %c0_15] : memref<3x16x128xf32, #tpu.memory_space<vmem>>, vector<1x16x128xf32>
    %28 = vector.shape_cast %27 : vector<1x16x128xf32> to vector<16x128xf32>
    %29 = arith.addf %3, %4 : vector<16x128xf32>
    %30 = vector.shape_cast %29 : vector<16x128xf32> to vector<1x16x128xf32>
    %cst_16 = arith.constant dense<0.000000e+00> : vector<16x128xf32>
    %31 = vector.multi_reduction <add>, %30, %cst_16 [0] : vector<1x16x128xf32> to vector<16x128xf32>
    %32 = arith.addf %28, %31 : vector<16x128xf32>
    %c1_17 = arith.constant 1 : index
    %c0_18 = arith.constant 0 : index
    %c0_19 = arith.constant 0 : index
    %33 = vector.load %arg3[%c1_17, %c0_18, %c0_19] : memref<3x16x128xf32, #tpu.memory_space<vmem>>, vector<1x16x128xf32>
    %34 = vector.shape_cast %33 : vector<1x16x128xf32> to vector<16x128xf32>
    %35 = vector.shape_cast %32 : vector<16x128xf32> to vector<1x16x128xf32>
    tpu.vector_store %arg3[%c1_17, %c0_18, %c0_19], %35 {strides = array<i32>} : memref<3x16x128xf32, #tpu.memory_space<vmem>>, vector<1x16x128xf32>,
    %c2 = arith.constant 2 : index
    %c0_20 = arith.constant 0 : index
    %c0_21 = arith.constant 0 : index
    %36 = vector.load %arg3[%c2, %c0_20, %c0_21] : memref<3x16x128xf32, #tpu.memory_space<vmem>>, vector<1x16x128xf32>
    %37 = vector.shape_cast %36 : vector<1x16x128xf32> to vector<16x128xf32>
    %38 = vector.shape_cast %17 : vector<16x128xf32> to vector<1x16x128xf32>
    %cst_22 = arith.constant dense<0.000000e+00> : vector<16x128xf32>
    %39 = vector.multi_reduction <add>, %38, %cst_22 [0] : vector<1x16x128xf32> to vector<16x128xf32>
    %40 = arith.addf %37, %39 : vector<16x128xf32>
    %c2_23 = arith.constant 2 : index
    %c0_24 = arith.constant 0 : index
    %c0_25 = arith.constant 0 : index
    %41 = vector.load %arg3[%c2_23, %c0_24, %c0_25] : memref<3x16x128xf32, #tpu.memory_space<vmem>>, vector<1x16x128xf32>
    %42 = vector.shape_cast %41 : vector<1x16x128xf32> to vector<16x128xf32>
    %43 = vector.shape_cast %40 : vector<16x128xf32> to vector<1x16x128xf32>
    tpu.vector_store %arg3[%c2_23, %c0_24, %c0_25], %43 {strides = array<i32>} : memref<3x16x128xf32, #tpu.memory_space<vmem>>, vector<1x16x128xf32>,
    return
  }
  func.func @transform_0(%arg0: i32) -> (i32, i32) {
    %c0_i32 = arith.constant 0 : i32
    %c0_i32_0 = arith.constant 0 : i32
    return %arg0, %c0_i32 : i32, i32
  }
  func.func @transform_1(%arg0: i32) -> (i32, i32) {
    %c0_i32 = arith.constant 0 : i32
    %c0_i32_0 = arith.constant 0 : i32
    return %arg0, %c0_i32 : i32, i32
  }
  func.func @transform_2(%arg0: i32) -> (i32, i32, i32) {
    %c0_i32 = arith.constant 0 : i32
    %c0_i32_0 = arith.constant 0 : i32
    %c0_i32_1 = arith.constant 0 : i32
    %c0_i32_2 = arith.constant 0 : i32
    return %c0_i32, %c0_i32_0, %c0_i32_1 : i32, i32, i32
  }
}

</mosaic_0001>

<bundles_post_ra>
// kernel: tpu_custom_call.1
= control target key start
LH: loop header
LB: loop body
LE: loop exit
PB: predicated region body
PF: predicated region fallthrough
CT: control target
= control target key end

     0   :  { %7 = vsyncpa [#allocation3], 0  ;;  %s242_s0 = inlined_call_operand.hbm [shape: f32[16,128], index: 0, kind: input, shape index: {}]   ;;  %s243_s1 = inlined_call_operand.hbm [shape: f32[16,128], index: 1, kind: input, shape index: {}]   ;;  %s244_s2 = inlined_call_operand.hbm [shape: f32[3,16,128], index: 2, kind: output, shape index: {}]  }
   0x1   :  { %8 = vsyncpa [#allocation6], 0 }
   0x2   :  { %9 = vsyncpa [#allocation4], 0  ;;  %s204_s9 = smov [#allocation2]  }
   0x3   :  { %s15_s10 = sshll.u32 %s204_s9, 4  ;;  %s16_s10 = int_to_ptr.vmem [resolvable:$true] %s15_s10 }
   0x4   :  { %s146_s11 = scalar_lea.vmem %s16_s10, 256  ;;  %p151_p1 = scmp.lt.s32.totalorder %s16_s10, %s16_s10 }
   0x5   :  { %p147_p0 = scmp.ne.s32.totalorder %s16_s10, %s146_s11  ;;  %p152_p2 = scmp.lt.s32.totalorder %s146_s11, %s146_s11 }
   0x7   :  { %p153_p3 = por %p152_p2, %p151_p1 }
   0x9   :  { %p154_p4 = pnand %p153_p3, %p147_p0 }
   0xb   :  { %157 = shalt.err (!%p154_p4)
}
   0xc   :  { %s205_s12 = smov 128   ;;  %s206_s13 = smov 8  }
   0xd   :  { %21 = dma.hbm_to_vmem [thread:$0]  %s242_s0, 256, %s16_s10, [#allocation3], %s205_s12, %s205_s12, %s206_s13  }
   0xe   :  { %s207_s16 = smov [#allocation5]  }
   0xf   :  { %s27_s17 = sshll.u32 %s207_s16, 4  ;;  %s28_s17 = int_to_ptr.vmem [resolvable:$true] %s27_s17 }
  0x10   :  { %s166_s18 = scalar_lea.vmem %s28_s17, 256  ;;  %p171_p6 = scmp.lt.s32.totalorder %s28_s17, %s28_s17 }
  0x11   :  { %p167_p5 = scmp.ne.s32.totalorder %s28_s17, %s166_s18  ;;  %p172_p7 = scmp.lt.s32.totalorder %s166_s18, %s166_s18 }
  0x13   :  { %p173_p8 = por %p172_p7, %p171_p6 }
  0x15   :  { %p174_p9 = pnand %p173_p8, %p167_p5 }
  0x17   :  { %177 = shalt.err (!%p174_p9)
}
  0x18   :  { %33 = dma.hbm_to_vmem [thread:$0]  %s243_s1, 256, %s28_s17, [#allocation6], %s205_s12, %s205_s12, %s206_s13  }
  0x19   :  { %198 = dma.done.wait [#allocation3], 256  }
  0x1a   :  { %199 = vsyncadd [#allocation3], 4294967040 }
  0x1b   :  { %200 = dma.done.wait [#allocation6], 256  }
  0x1c   :  { %201 = vsyncadd [#allocation6], 4294967040  ;;  %v50_v0 = vld [vmem:[#allocation2] sm:$0xff]  ;;  %v52_v1 = vld [vmem:[#allocation5] sm:$0xff]  ;;  %s208_s0 = smov [#allocation7]  }
  0x1d   :  { %v51_v2 = vld [vmem:[#allocation2 + $0x8] sm:$0xff]  ;;  %130 = vlog2.f32 %v50_v0  ;;  %v78_v3 = vmul.f32 %v52_v1, %v50_v0  ;;  %v53_v4 = vld [vmem:[#allocation5 + $0x8] sm:$0xff]  ;;  %v89_v5 = vadd.f32 %v52_v1, %v50_v0  ;;  %v60_v6 = vsub.f32 1.0, %v50_v0  ;;  %s111_s1 = sshll.u32 %s208_s0, 4  ;;  %s112_s1 = int_to_ptr.vmem [resolvable:$true] %s111_s1 }
  0x1e   :  { %132 = vlog2.f32 %v51_v2  ;;  %v79_v7 = vmul.f32 %v53_v4, %v51_v2  ;;  %v90_v8 = vadd.f32 %v53_v4, %v51_v2  ;;  %v61_v9 = vsub.f32 1.0, %v51_v2  ;;  %s178_s21 = scalar_lea.vmem %s112_s1, 768  ;;  %p183_p11 = scmp.lt.s32.totalorder %s112_s1, %s112_s1 }
  0x1f   :  { %134 = vlog2.f32 %v60_v6  ;;  %84 = vst [vmem:[#allocation7] sm:$0xff] %v78_v3  ;;  %95 = vst [vmem:[#allocation7 + $0x10] sm:$0xff] %v89_v5  ;;  %p179_p10 = scmp.ne.s32.totalorder %s112_s1, %s178_s21  ;;  %p184_p12 = scmp.lt.s32.totalorder %s178_s21, %s178_s21 }
  0x20   :  { %136 = vlog2.f32 %v61_v9  ;;  %85 = vst [vmem:[#allocation7 + $0x8] sm:$0xff] %v79_v7  ;;  %96 = vst [vmem:[#allocation7 + $0x18] sm:$0xff] %v90_v8 }
  0x21   :  { %p185_p13 = por %p184_p12, %p183_p11 }
  0x23   :  { %p186_p0 = pnand %p185_p13, %p179_p10 }
  0x2a   :  { %v131_v10 = vpop.eup %130 }
  0x2b   :  { %v133_v11 = vpop.eup %132  ;;  %v55_v12 = vmul.f32 0.6931472, %v131_v10 }
  0x2c   :  { %v135_v13 = vpop.eup %134  ;;  %v57_v14 = vmul.f32 0.6931472, %v133_v11 }
  0x2d   :  { %v137_v15 = vpop.eup %136  ;;  %v58_v16 = vmax.f32 %v55_v12, -100.0  ;;  %v63_v17 = vmul.f32 0.6931472, %v135_v13 }
  0x2e   :  { %v59_v18 = vmax.f32 %v57_v14, -100.0  ;;  %v65_v19 = vmul.f32 0.6931472, %v137_v15 }
  0x2f   :  { %v66_v20 = vmax.f32 %v63_v17, -100.0 }
  0x30   :  { %v67_v21 = vmax.f32 %v65_v19, -100.0 }
  0x31   :  { %v68_v22 = vsub.f32 %v58_v16, %v66_v20 }
  0x32   :  { %v69_v23 = vsub.f32 %v59_v18, %v67_v21 }
  0x33   :  { %v70_v24 = vmul.f32 %v68_v22, %v52_v1 }
  0x34   :  { %v71_v25 = vmul.f32 %v69_v23, %v53_v4 }
  0x35   :  { %v72_v26 = vadd.f32 %v70_v24, %v66_v20 }
  0x36   :  { %v73_v27 = vadd.f32 %v71_v25, %v67_v21 }
  0x37   :  { %v74_v28 = vsub.f32 0.0, %v72_v26 }
  0x38   :  { %v75_v29 = vsub.f32 0.0, %v73_v27 }
  0x39   :  { %104 = vst [vmem:[#allocation7 + $0x20] sm:$0xff] %v74_v28 }
  0x3a   :  { %105 = vst [vmem:[#allocation7 + $0x28] sm:$0xff] %v75_v29 }
  0x3b   :  { %189 = shalt.err (!%p186_p0)
}
  0x3c   :  { %117 = dma.vmem_to_hbm [thread:$0]  %s112_s1, 768, %s244_s2, [#allocation4], %s205_s12, %s205_s12, %s206_s13  }
  0x3d   :  { %202 = dma.done.wait [#allocation4], 768  }
  0x3e   :  { %203 = vsyncadd [#allocation4], 4294966528 }
  0x3f   :  { %121 = vsyncpa [#allocation3], 1 }
  0x40   :  { %122 = vsyncpa [#allocation6], 1 }
  0x41   :  { %123 = vsyncpa [#allocation4], 1 }

</bundles_post_ra>
